<compile_context>
chip_gen: v6e
topology: v6e:2x2x1
jax: 0.10.0
libtpu: 0.0.40
codegen_flags: <defaults>
</compile_context>

<pallas_src>
import functools
import numpy as np
import jax
import jax.numpy as jnp
from jax.experimental import pallas as pl
from jax.experimental.pallas import tpu as pltpu


# ----------------------- bicubic weight matrices (host-side, cached) ---------
def _cubic(x, a=-0.75):
    x = np.abs(x)
    return np.where(
        x <= 1.0, (a + 2.0) * x**3 - (a + 3.0) * x**2 + 1.0,
        np.where(x < 2.0, a * x**3 - 5.0 * a * x**2 + 8.0 * a * x - 4.0 * a, 0.0))


@functools.lru_cache(maxsize=None)
def bicubic_matrix(in_size, out_size):
    # torch F.interpolate(mode="bicubic", align_corners=False), replicate border.
    # Rows sum to exactly 1, so resize(a*x + b) == a*resize(x) + b (affine fold).
    scale = in_size / out_size
    W = np.zeros((out_size, in_size), dtype=np.float32)
    for i in range(out_size):
        src = (i + 0.5) * scale - 0.5
        fl = int(np.floor(src))
        t = src - fl
        for k in range(-1, 3):
            w = float(_cubic(t - k))
            idx = min(max(fl + k, 0), in_size - 1)
            W[i, idx] += w
    return W


def _block_diag(mat, n):
    r, c = mat.shape
    out = np.zeros((n * r, n * c), dtype=mat.dtype)
    for i in range(n):
        out[i * r:(i + 1) * r, i * c:(i + 1) * c] = mat
    return out


# --------------------------------- fused kernel ------------------------------
def _simswap_fused_kernel(x_ref, noise_ref, warc_ref, wsc_ref, wbi_ref,
                          ww1t_ref, wh1_ref, ww2t_ref, wh2_ref, o_ref):
    """One batch item per grid step; everything stays in VMEM / vregs."""
    x2d = x_ref[0]                                      # (C*H, W), channel-major rows

    # -- synthetic netArc: per-channel global average pool + linear projection,
    #    pooling folded into warc_ref so it is a single matvec.
    # TODO(synk): stands in for the real ArcFace ResNet (netArc) checkpoint.
    rowsum = jnp.sum(x2d, axis=1, keepdims=True)        # (C*H, 1)
    emb = jnp.dot(warc_ref[...], rowsum,
                  preferred_element_type=jnp.float32)   # (D, 1)

    # -- latend_id = noise_mk(latend_id);  latend_id /= ||latend_id||_2 (+eps)
    lat = emb + noise_ref[0]                            # (D, 1)
    lat = lat * jax.lax.rsqrt(jnp.sum(lat * lat, axis=0, keepdims=True) + 1e-12)

    # -- synthetic generator style: latent -> per-channel (scale, bias),
    #    pre-broadcast to one coefficient per resized row (C*G rows).
    mod_scale = jnp.dot(wsc_ref[...], lat, preferred_element_type=jnp.float32)   # (C*G, 1)
    mod_bias = jnp.dot(wbi_ref[...], lat, preferred_element_type=jnp.float32)    # (C*G, 1)

    # -- resize #1: bicubic(0.5*x + 0.5) as two batched matmuls over all planes
    #    (0.5 folded into the block-diagonal height weights, +0.5 added once).
    y1 = jnp.dot(x2d, ww1t_ref[...], preferred_element_type=jnp.float32)         # (C*H, G)
    z = jnp.dot(wh1_ref[...], y1, preferred_element_type=jnp.float32) + 0.5      # (C*G, G)

    # -- synthetic swapper: per-channel affine modulation + sigmoid.
    # TODO(synk): stands in for the SimSwap AEI generator CNN.
    m = jax.nn.sigmoid(z * (1.0 + mod_scale) + mod_bias)                          # (C*G, G)

    # -- resize #2: bicubic(2*m - 1); 2 folded into the height weights, -1 once.
    w2 = jnp.dot(m, ww2t_ref[...], preferred_element_type=jnp.float32)            # (C*G, O)
    o_ref[0] = jnp.dot(wh2_ref[...], w2,
                       preferred_element_type=jnp.float32) - 1.0                  # (C*O, O)


# ------------------------------- module wrapper -------------------------------
class SimSwapPallas:
    """SimSwap.forward with synthetic netArc / generator, as one fused Pallas call."""

    def __init__(self, key, channels=3, embed_dim=32, in_size=16,
                 gen_size=32, out_size=16):
        self.C, self.D = channels, embed_dim
        self.in_size, self.gen_size, self.out_size = in_size, gen_size, out_size
        C, D, H, G, O = channels, embed_dim, in_size, gen_size, out_size
        k1, k2 = jax.random.split(key, 2)

        # synthetic netArc projection (pooled features -> identity embedding);
        # the per-channel global-average-pool is folded in: emb = warc_pool @ rowsum(x)
        w_arc = 0.1 * jax.random.normal(k1, (C, D), jnp.float32)          # (C, D)
        self.warc_pool = jnp.repeat(w_arc.T, H, axis=1) / float(H * H)    # (D, C*H)

        # synthetic generator style projection (embedding -> per-channel scale|bias),
        # pre-broadcast to one coefficient per resized row.
        w_style = 0.1 * jax.random.normal(k2, (D, 2 * C), jnp.float32)    # (D, 2C)
        self.w_scale = jnp.repeat(w_style.T[:C, :], G, axis=0)            # (C*G, D)
        self.w_bias = jnp.repeat(w_style.T[C:, :], G, axis=0)             # (C*G, D)

        # cached bicubic weights with the affine pre/post scales folded in:
        #   resize(0.5x+0.5) = (0.5*Wh1) @ x @ Ww1^T + 0.5
        #   resize(2y-1)     = (2.0*Wh2) @ y @ Ww2^T - 1
        wh1 = 0.5 * bicubic_matrix(H, G)                                  # (G, H)
        wh2 = 2.0 * bicubic_matrix(G, O)                                  # (O, G)
        self.ww1t = jnp.asarray(bicubic_matrix(H, G).T)                   # (H, G)
        self.ww2t = jnp.asarray(bicubic_matrix(G, O).T)                   # (G, O)
        # block-diagonal height weights -> one batched matmul over all C planes
        self.wh1blk = jnp.asarray(_block_diag(wh1, C))                    # (C*G, C*H)
        self.wh2blk = jnp.asarray(_block_diag(wh2, C))                    # (C*O, C*G)

        self._fwd = jax.jit(self._forward)

    def _forward(self, x, noise):
        B, C, H, W = x.shape
        G, O, D = self.gen_size, self.out_size, self.D
        x2d = x.reshape(B, C * H, W)          # channel-major rows per batch item
        noise_col = noise.reshape(B, D, 1)    # latent path is column-oriented

        out = pl.pallas_call(
            _simswap_fused_kernel,
            out_shape=jax.ShapeDtypeStruct((B, C * O, O), jnp.float32),
            grid=(B,),
            in_specs=[
                pl.BlockSpec((1, C * H, W), lambda b: (b, 0, 0)),
                pl.BlockSpec((1, D, 1), lambda b: (b, 0, 0)),
                pl.BlockSpec((D, C * H), lambda b: (0, 0)),
                pl.BlockSpec((C * G, D), lambda b: (0, 0)),
                pl.BlockSpec((C * G, D), lambda b: (0, 0)),
                pl.BlockSpec((H, G), lambda b: (0, 0)),
                pl.BlockSpec((C * G, C * H), lambda b: (0, 0)),
                pl.BlockSpec((G, O), lambda b: (0, 0)),
                pl.BlockSpec((C * O, C * G), lambda b: (0, 0)),
            ],
            out_specs=pl.BlockSpec((1, C * O, O), lambda b: (b, 0, 0)),
            compiler_params=pltpu.CompilerParams(
                dimension_semantics=("parallel",)),
        )(x2d, noise_col, self.warc_pool, self.w_scale, self.w_bias,
          self.ww1t, self.wh1blk, self.ww2t, self.wh2blk)

        return out.reshape(B, C, O, O)

    def __call__(self, x, noise):
        return self._fwd(x, noise)


if __name__ == "__main__":
    key = jax.random.PRNGKey(0)
    kx, kn, kp = jax.random.split(key, 3)
    B, C, H, W, D = 2, 3, 16, 16, 32
    x = jnp.tanh(jax.random.normal(kx, (B, C, H, W), jnp.float32))   # face image in [-1, 1]
    noise = 0.05 * jax.random.normal(kn, (B, D), jnp.float32)        # deterministic noise_mk

    model = SimSwapPallas(kp, channels=C, embed_dim=D, in_size=H,
                          gen_size=32, out_size=16)                  # analogues of 224 / 112
    out = model(x, noise)
    jax.block_until_ready(out)
    assert out.shape == (B, C, 16, 16) and out.dtype == jnp.float32
    print("KERNEL_OK")
</pallas_src>

<mosaic_0001>
module attributes {stable_mosaic.version = 11 : i64} {
  func.func @_simswap_fused_kernel(%arg0: i32, %arg1: memref<1x48x16xf32, #tpu.memory_space<vmem>>, %arg2: memref<1x32x1xf32, #tpu.memory_space<vmem>>, %arg3: memref<32x48xf32, #tpu.memory_space<vmem>>, %arg4: memref<96x32xf32, #tpu.memory_space<vmem>>, %arg5: memref<96x32xf32, #tpu.memory_space<vmem>>, %arg6: memref<16x32xf32, #tpu.memory_space<vmem>>, %arg7: memref<96x48xf32, #tpu.memory_space<vmem>>, %arg8: memref<32x16xf32, #tpu.memory_space<vmem>>, %arg9: memref<48x96xf32, #tpu.memory_space<vmem>>, %arg10: memref<1x48x16xf32, #tpu.memory_space<vmem>>) attributes {dimension_semantics = [#tpu.dimension_semantics<parallel>], iteration_bounds = array<i64: 2>, scalar_prefetch = 0 : i64, scratch_operands = 0 : i64, tpu.core_type = #tpu.core_type<tc>, window_params = [{transform_indices = @transform_0, window_bounds = array<i64: 1, 48, 16>}, {transform_indices = @transform_1, window_bounds = array<i64: 1, 32, 1>}, {pipeline_mode = #tpu.pipeline_mode<synchronous>, transform_indices = @transform_2, window_bounds = array<i64: 32, 48>}, {pipeline_mode = #tpu.pipeline_mode<synchronous>, transform_indices = @transform_3, window_bounds = array<i64: 96, 32>}, {pipeline_mode = #tpu.pipeline_mode<synchronous>, transform_indices = @transform_4, window_bounds = array<i64: 96, 32>}, {pipeline_mode = #tpu.pipeline_mode<synchronous>, transform_indices = @transform_5, window_bounds = array<i64: 16, 32>}, {pipeline_mode = #tpu.pipeline_mode<synchronous>, transform_indices = @transform_6, window_bounds = array<i64: 96, 48>}, {pipeline_mode = #tpu.pipeline_mode<synchronous>, transform_indices = @transform_7, window_bounds = array<i64: 32, 16>}, {pipeline_mode = #tpu.pipeline_mode<synchronous>, transform_indices = @transform_8, window_bounds = array<i64: 48, 96>}, {transform_indices = @transform_9, window_bounds = array<i64: 1, 48, 16>}]} {
    %c0 = arith.constant 0 : index
    %c0_0 = arith.constant 0 : index
    %c0_1 = arith.constant 0 : index
    %0 = vector.load %arg1[%c0, %c0_0, %c0_1] : memref<1x48x16xf32, #tpu.memory_space<vmem>>, vector<1x48x16xf32>
    %1 = vector.shape_cast %0 : vector<1x48x16xf32> to vector<48x16xf32>
    %cst = arith.constant dense<0.000000e+00> : vector<48xf32>
    %2 = vector.multi_reduction <add>, %1, %cst [1] : vector<48x16xf32> to vector<48xf32>
    %3 = vector.shape_cast %2 : vector<48xf32> to vector<48x1xf32>
    %c0_2 = arith.constant 0 : index
    %c0_3 = arith.constant 0 : index
    %4 = vector.load %arg3[%c0_2, %c0_3] : memref<32x48xf32, #tpu.memory_space<vmem>>, vector<32x48xf32>
    %cst_4 = arith.constant dense<0.000000e+00> : vector<32x1xf32>
    %5 = tpu.matmul %4, %3, %cst_4 {dimension_numbers = #tpu.dot_dimension_numbers<[1], [0], [0], [1], [0, 0, 1, 1], [], []>} : vector<32x48xf32>, vector<48x1xf32>, vector<32x1xf32> -> vector<32x1xf32>
    %c0_5 = arith.constant 0 : index
    %c0_6 = arith.constant 0 : index
    %c0_7 = arith.constant 0 : index
    %6 = vector.load %arg2[%c0_5, %c0_6, %c0_7] : memref<1x32x1xf32, #tpu.memory_space<vmem>>, vector<1x32x1xf32>
    %7 = vector.shape_cast %6 : vector<1x32x1xf32> to vector<32x1xf32>
    %8 = arith.addf %5, %7 : vector<32x1xf32>
    %9 = arith.mulf %8, %8 : vector<32x1xf32>
    %cst_8 = arith.constant dense<0.000000e+00> : vector<1xf32>
    %10 = vector.multi_reduction <add>, %9, %cst_8 [0] : vector<32x1xf32> to vector<1xf32>
    %11 = vector.shape_cast %10 : vector<1xf32> to vector<1x1xf32>
    %cst_9 = arith.constant 9.99999996E-13 : f32
    %12 = vector.broadcast %cst_9 : f32 to vector<1x1xf32>
    %13 = arith.addf %11, %12 : vector<1x1xf32>
    %14 = math.rsqrt %13 : vector<1x1xf32>
    %15 = vector.broadcast %14 : vector<1x1xf32> to vector<32x1xf32>
    %16 = arith.mulf %8, %15 : vector<32x1xf32>
    %c0_10 = arith.constant 0 : index
    %c0_11 = arith.constant 0 : index
    %17 = vector.load %arg4[%c0_10, %c0_11] : memref<96x32xf32, #tpu.memory_space<vmem>>, vector<96x32xf32>
    %cst_12 = arith.constant dense<0.000000e+00> : vector<96x1xf32>
    %18 = tpu.matmul %17, %16, %cst_12 {dimension_numbers = #tpu.dot_dimension_numbers<[1], [0], [0], [1], [0, 0, 1, 1], [], []>} : vector<96x32xf32>, vector<32x1xf32>, vector<96x1xf32> -> vector<96x1xf32>
    %c0_13 = arith.constant 0 : index
    %c0_14 = arith.constant 0 : index
    %19 = vector.load %arg5[%c0_13, %c0_14] : memref<96x32xf32, #tpu.memory_space<vmem>>, vector<96x32xf32>
    %cst_15 = arith.constant dense<0.000000e+00> : vector<96x1xf32>
    %20 = tpu.matmul %19, %16, %cst_15 {dimension_numbers = #tpu.dot_dimension_numbers<[1], [0], [0], [1], [0, 0, 1, 1], [], []>} : vector<96x32xf32>, vector<32x1xf32>, vector<96x1xf32> -> vector<96x1xf32>
    %c0_16 = arith.constant 0 : index
    %c0_17 = arith.constant 0 : index
    %21 = vector.load %arg6[%c0_16, %c0_17] : memref<16x32xf32, #tpu.memory_space<vmem>>, vector<16x32xf32>
    %cst_18 = arith.constant dense<0.000000e+00> : vector<48x32xf32>
    %22 = tpu.matmul %1, %21, %cst_18 {dimension_numbers = #tpu.dot_dimension_numbers<[1], [0], [0], [1], [0, 0, 1, 1], [], []>} : vector<48x16xf32>, vector<16x32xf32>, vector<48x32xf32> -> vector<48x32xf32>
    %c0_19 = arith.constant 0 : index
    %c0_20 = arith.constant 0 : index
    %23 = vector.load %arg7[%c0_19, %c0_20] : memref<96x48xf32, #tpu.memory_space<vmem>>, vector<96x48xf32>
    %cst_21 = arith.constant dense<0.000000e+00> : vector<96x32xf32>
    %24 = tpu.matmul %23, %22, %cst_21 {dimension_numbers = #tpu.dot_dimension_numbers<[1], [0], [0], [1], [0, 0, 1, 1], [], []>} : vector<96x48xf32>, vector<48x32xf32>, vector<96x32xf32> -> vector<96x32xf32>
    %cst_22 = arith.constant 5.000000e-01 : f32
    %25 = vector.broadcast %cst_22 : f32 to vector<96x32xf32>
    %26 = arith.addf %24, %25 : vector<96x32xf32>
    %cst_23 = arith.constant 1.000000e+00 : f32
    %27 = vector.broadcast %cst_23 : f32 to vector<96x1xf32>
    %28 = arith.addf %27, %18 : vector<96x1xf32>
    %29 = vector.broadcast %28 : vector<96x1xf32> to vector<96x32xf32>
    %30 = arith.mulf %26, %29 : vector<96x32xf32>
    %31 = vector.broadcast %20 : vector<96x1xf32> to vector<96x32xf32>
    %32 = arith.addf %30, %31 : vector<96x32xf32>
    %33 = arith.negf %32 : vector<96x32xf32>
    %34 = math.exp %33 : vector<96x32xf32>
    %cst_24 = arith.constant 1.000000e+00 : f32
    %35 = vector.broadcast %cst_24 : f32 to vector<96x32xf32>
    %36 = arith.addf %35, %34 : vector<96x32xf32>
    %37 = arith.divf %35, %36 : vector<96x32xf32>
    %c0_25 = arith.constant 0 : index
    %c0_26 = arith.constant 0 : index
    %38 = vector.load %arg8[%c0_25, %c0_26] : memref<32x16xf32, #tpu.memory_space<vmem>>, vector<32x16xf32>
    %cst_27 = arith.constant dense<0.000000e+00> : vector<96x16xf32>
    %39 = tpu.matmul %37, %38, %cst_27 {dimension_numbers = #tpu.dot_dimension_numbers<[1], [0], [0], [1], [0, 0, 1, 1], [], []>} : vector<96x32xf32>, vector<32x16xf32>, vector<96x16xf32> -> vector<96x16xf32>
    %c0_28 = arith.constant 0 : index
    %c0_29 = arith.constant 0 : index
    %40 = vector.load %arg9[%c0_28, %c0_29] : memref<48x96xf32, #tpu.memory_space<vmem>>, vector<48x96xf32>
    %cst_30 = arith.constant dense<0.000000e+00> : vector<48x16xf32>
    %41 = tpu.matmul %40, %39, %cst_30 {dimension_numbers = #tpu.dot_dimension_numbers<[1], [0], [0], [1], [0, 0, 1, 1], [], []>} : vector<48x96xf32>, vector<96x16xf32>, vector<48x16xf32> -> vector<48x16xf32>
    %cst_31 = arith.constant 1.000000e+00 : f32
    %42 = vector.broadcast %cst_31 : f32 to vector<48x16xf32>
    %43 = arith.subf %41, %42 : vector<48x16xf32>
    %c0_32 = arith.constant 0 : index
    %c0_33 = arith.constant 0 : index
    %c0_34 = arith.constant 0 : index
    %44 = vector.load %arg10[%c0_32, %c0_33, %c0_34] : memref<1x48x16xf32, #tpu.memory_space<vmem>>, vector<1x48x16xf32>
    %45 = vector.shape_cast %44 : vector<1x48x16xf32> to vector<48x16xf32>
    %46 = vector.shape_cast %43 : vector<48x16xf32> to vector<1x48x16xf32>
    tpu.vector_store %arg10[%c0_32, %c0_33, %c0_34], %46 {strides = array<i32>} : memref<1x48x16xf32, #tpu.memory_space<vmem>>, vector<1x48x16xf32>,
    return
  }
  func.func @transform_0(%arg0: i32) -> (i32, i32, i32) {
    %c0_i32 = arith.constant 0 : i32
    %c0_i32_0 = arith.constant 0 : i32
    %c0_i32_1 = arith.constant 0 : i32
    return %arg0, %c0_i32, %c0_i32_0 : i32, i32, i32
  }
  func.func @transform_1(%arg0: i32) -> (i32, i32, i32) {
    %c0_i32 = arith.constant 0 : i32
    %c0_i32_0 = arith.constant 0 : i32
    %c0_i32_1 = arith.constant 0 : i32
    return %arg0, %c0_i32, %c0_i32_0 : i32, i32, i32
  }
  func.func @transform_2(%arg0: i32) -> (i32, i32) {
    %c0_i32 = arith.constant 0 : i32
    %c0_i32_0 = arith.constant 0 : i32
    %c0_i32_1 = arith.constant 0 : i32
    return %c0_i32, %c0_i32_0 : i32, i32
  }
  func.func @transform_3(%arg0: i32) -> (i32, i32) {
    %c0_i32 = arith.constant 0 : i32
    %c0_i32_0 = arith.constant 0 : i32
    %c0_i32_1 = arith.constant 0 : i32
    return %c0_i32, %c0_i32_0 : i32, i32
  }
  func.func @transform_4(%arg0: i32) -> (i32, i32) {
    %c0_i32 = arith.constant 0 : i32
    %c0_i32_0 = arith.constant 0 : i32
    %c0_i32_1 = arith.constant 0 : i32
    return %c0_i32, %c0_i32_0 : i32, i32
  }
  func.func @transform_5(%arg0: i32) -> (i32, i32) {
    %c0_i32 = arith.constant 0 : i32
    %c0_i32_0 = arith.constant 0 : i32
    %c0_i32_1 = arith.constant 0 : i32
    return %c0_i32, %c0_i32_0 : i32, i32
  }
  func.func @transform_6(%arg0: i32) -> (i32, i32) {
    %c0_i32 = arith.constant 0 : i32
    %c0_i32_0 = arith.constant 0 : i32
    %c0_i32_1 = arith.constant 0 : i32
    return %c0_i32, %c0_i32_0 : i32, i32
  }
  func.func @transform_7(%arg0: i32) -> (i32, i32) {
    %c0_i32 = arith.constant 0 : i32
    %c0_i32_0 = arith.constant 0 : i32
    %c0_i32_1 = arith.constant 0 : i32
    return %c0_i32, %c0_i32_0 : i32, i32
  }
  func.func @transform_8(%arg0: i32) -> (i32, i32) {
    %c0_i32 = arith.constant 0 : i32
    %c0_i32_0 = arith.constant 0 : i32
    %c0_i32_1 = arith.constant 0 : i32
    return %c0_i32, %c0_i32_0 : i32, i32
  }
  func.func @transform_9(%arg0: i32) -> (i32, i32, i32) {
    %c0_i32 = arith.constant 0 : i32
    %c0_i32_0 = arith.constant 0 : i32
    %c0_i32_1 = arith.constant 0 : i32
    return %arg0, %c0_i32, %c0_i32_0 : i32, i32, i32
  }
}

</mosaic_0001>

<bundles_post_ra>
// kernel: _forward.1
= control target key start
LH: loop header
LB: loop body
LE: loop exit
PB: predicated region body
PF: predicated region fallthrough
CT: control target
= control target key end

     0   :  { %s3104_s0 = inlined_call_operand.hbm [shape: f32[2,48,16], index: 0, kind: input, shape index: {}]   ;;  %s3105_s1 = inlined_call_operand.vmem [shape: f32[2,32,1], index: 1, kind: input, shape index: {}]   ;;  %s3106_s2 = inlined_call_operand.hbm [shape: f32[32,48], index: 2, kind: input, shape index: {}]   ;;  %s3107_s3 = inlined_call_operand.hbm [shape: f32[96,32], index: 3, kind: input, shape index: {}]   ;;  %s3108_s4 = inlined_call_operand.hbm [shape: f32[96,32], index: 4, kind: input, shape index: {}]   ;;  %s3109_s5 = inlined_call_operand.hbm [shape: f32[16,32], index: 5, kind: input, shape index: {}]   ;;  %s3110_s6 = inlined_call_operand.hbm [shape: f32[96,48], index: 6, kind: input, shape index: {}]   ;;  %s3111_s7 = inlined_call_operand.vmem [shape: f32[32,16], index: 7, kind: input, shape index: {}]   ;;  %s3112_s8 = inlined_call_operand.vmem [shape: f32[48,96], index: 8, kind: input, shape index: {}]   ;;  %s3113_s9 = inlined_call_operand.hbm [shape: f32[2,48,16], index: 9, kind: output, shape index: {}]  }
   0x1   :  { %3120 = sst [smem:[#allocation19_spill]] %s3106_s2 }
   0x2   :  { %3121 = sst [smem:[#allocation20_spill]] %s3107_s3 }
   0x3   :  { %3122 = sst [smem:[#allocation21_spill]] %s3108_s4 }
   0x4   :  { %14 = vsyncpa [#allocation3], 0 }
   0x5   :  { %16 = vsyncpa [#allocation3 + $0x1], 0 }
   0x6   :  { %17 = vsyncpa [#allocation6], 0 }
   0x7   :  { %18 = vsyncpa [#allocation9], 0 }
   0x8   :  { %19 = vsyncpa [#allocation12], 0 }
   0x9   :  { %20 = vsyncpa [#allocation4], 0 }
   0xa   :  { %22 = vsyncpa [#allocation4 + $0x1], 0  ;;  %s2727_s30 = smov 0   ;;  %s2729_s10 = smov 0  }
   0xb   :  { %s2731_s11 = smov 0   ;;  %s2733_s12 = smov 0  }
   0xc LB: > { %s2665_s13 = smov [#allocation5]   ;;  %s2748_s15 = sadd.s32 4294967295, %s2663_s12   ;;  %s2663_s12 = sphi %s2733_s12, %s3149_s12   ;;  %s2659_s11 = sphi %s2731_s11, %s3148_s11   ;;  %s2655_s10 = sphi %s2729_s10, %s3147_s10   ;;  %s2651_s30 = sphi %s2727_s30, %s3146_s30  }
   0xd   : > { %s270_s14 = sshll.u32 %s2665_s13, 4  ;;  %p1895_p0 = scmp.ge.s32.totalorder %s2663_s12, 1  ;;  %s271_s14 = int_to_ptr.vmem [resolvable:$true] %s270_s14 }
   0xe   : > { %p3116_p1 = scmp.eq.s32.totalorder %s2748_s15, 0  ;;  %p258_p2 = scmp.lt.s32.totalorder %s2663_s12, 3 }
   0xf   : > { %s2666_s17 = smov [#allocation8]   ;;  %s2667_s20 = smov [#allocation7]  }
  0x10   : > { %p2753_p3 = pnand %p1895_p0, %p258_p2  ;;  %s296_s18 = sshll.u32 %s2666_s17, 4  ;;  %s2766_s18 = int_to_ptr.vmem [resolvable:$true] %s296_s18 }
  0x11   : > { %s283_s21 = sshll.u32 %s2667_s20, 4  ;;  %s2440_s23 = scalar_lea.vmem %s271_s14, 512  ;;  %s2768_s21 = int_to_ptr.vmem [resolvable:$true] %s283_s21 }
  0x12   : > { %s3123_s16 = scalar_select %p2753_p3, 1, 0 }
  0x13   : > { %p2299_p5 = pneg %p2753_p3  ;;  %p2441_p8 = scmp.ne.s32.totalorder %s271_s14, %s2440_s23 }
  0x14   : > { %p2448_p11 = scmp.lt.s32.totalorder %s271_s14, %s271_s14  ;;  %p2449_p12 = scmp.lt.s32.totalorder %s2440_s23, %s2440_s23 }
  0x15   : > { %p2762_p6 = pnand %p2299_p5, %p3116_p1 }
  0x16   : > { %p2450_p13 = por %p2449_p12, %p2448_p11 }
  0x17   : > { %p2772_p7 = pneg %p2762_p6 }
  0x19   : > { %p2443_p9 = pnand %p2441_p8, %p2772_p7 }
  0x1b   : > { %p2444_p10 = pneg %p2443_p9 }
  0x1d   : > { %p2451_p0 = pnand %p2450_p13, %p2444_p10 }
  0x1f   : > { %2454 = shalt.err (!%p2451_p0)
}
  0x20   : > { %s3114_s24 = smov 128   ;;  %s3115_s25 = smov 8  }
  0x21   : > { %s3126_s2 = sld [smem:[#allocation19_spill]]  ;;  %s2466_s28 = scalar_lea.vmem %s2766_s18, 1536 }
  0x22   : > { %p2467_p2 = scmp.ne.s32.totalorder %s2766_s18, %s2466_s28  ;;  %p2474_p9 = scmp.lt.s32.totalorder %s2766_s18, %s2766_s18 }
  0x23   : > { %p2475_p10 = scmp.lt.s32.totalorder %s2466_s28, %s2466_s28 }
  0x24   : > { %p2469_p5 = pnand %p2467_p2, %p2772_p7 }
  0x25   : > { %p2476_p11 = por %p2475_p10, %p2474_p9 }
  0x26   : > { %p2470_p8 = pneg %p2469_p5 }
  0x27   : > { %2302 = dma.hbm_to_vmem [thread:$0]  (!%p2762_p6), %s3126_s2, 512, %s271_s14, [#allocation6], %s3114_s24, %s3114_s24, %s3115_s25  }
  0x28   : > { %p2477_p12 = pnand %p2476_p11, %p2470_p8 }
  0x2a   : > { %2480 = shalt.err (!%p2477_p12)
}
  0x2b   : > { %s3127_s4 = sld [smem:[#allocation21_spill]]  ;;  %s2492_s14 = scalar_lea.vmem %s2768_s21, 1536 }
  0x2c   : > { %p2493_p13 = scmp.ne.s32.totalorder %s2768_s21, %s2492_s14  ;;  %p2500_p5 = scmp.lt.s32.totalorder %s2768_s21, %s2768_s21 }
  0x2d   : > { %p2501_p8 = scmp.lt.s32.totalorder %s2492_s14, %s2492_s14 }
  0x2e   : > { %p2495_p0 = pnand %p2493_p13, %p2772_p7 }
  0x2f   : > { %p2502_p9 = por %p2501_p8, %p2500_p5 }
  0x30   : > { %p2496_p2 = pneg %p2495_p0 }
  0x31   : > { %2308 = dma.hbm_to_vmem [thread:$0]  (!%p2762_p6), %s3127_s4, 1536, %s2766_s18, [#allocation9], %s3114_s24, %s3114_s24, %s3115_s25  }
  0x32   : > { %p2503_p10 = pnand %p2502_p9, %p2496_p2 }
  0x34   : > { %2506 = shalt.err (!%p2503_p10)
}
  0x35   : > { %s3128_s3 = sld [smem:[#allocation20_spill]]  ;;  %s2670_s18 = smov [#allocation10]  }
  0x36   : > { %s309_s23 = sshll.u32 %s2670_s18, 4  ;;  %s2671_s26 = smov [#allocation11]   ;;  %s310_s23 = int_to_ptr.vmem [resolvable:$true] %s309_s23 }
  0x37   : > { %s322_s27 = sshll.u32 %s2671_s26, 4  ;;  %s2518_s28 = scalar_lea.vmem %s310_s23, 256  ;;  %s323_s27 = int_to_ptr.vmem [resolvable:$true] %s322_s27 }
  0x38   : > { %p2519_p11 = scmp.ne.s32.totalorder %s310_s23, %s2518_s28  ;;  %p2526_p0 = scmp.lt.s32.totalorder %s310_s23, %s310_s23 }
  0x39   : > { %p2527_p2 = scmp.lt.s32.totalorder %s2518_s28, %s2518_s28 }
  0x3a   : > { %p2521_p12 = pnand %p2519_p11, %p2772_p7 }
  0x3b   : > { %2305 = dma.hbm_to_vmem [thread:$0]  (!%p2762_p6), %s3128_s3, 1536, %s2768_s21, [#allocation6], %s3114_s24, %s3114_s24, %s3115_s25  }
  0x3c   : > { %p2522_p13 = pneg %p2521_p12  ;;  %p2528_p5 = por %p2527_p2, %p2526_p0 }
  0x3e   : > { %p2529_p8 = pnand %p2528_p5, %p2522_p13 }
  0x40   : > { %2532 = shalt.err (!%p2529_p8)
}
  0x41   : > { %2311 = dma.hbm_to_vmem [thread:$0]  (!%p2762_p6), %s3109_s5, 256, %s310_s23, [#allocation9], %s3114_s24, %s3114_s24, %s3115_s25  }
  0x42   : > { %s2544_s13 = scalar_lea.vmem %s323_s27, 1536  ;;  %p2552_p12 = scmp.lt.s32.totalorder %s323_s27, %s323_s27 }
  0x43   : > { %p2545_p9 = scmp.ne.s32.totalorder %s323_s27, %s2544_s13  ;;  %p2553_p0 = scmp.lt.s32.totalorder %s2544_s13, %s2544_s13 }
  0x45   : > { %p2547_p10 = pnand %p2545_p9, %p2772_p7  ;;  %p2554_p13 = por %p2553_p0, %p2552_p12 }
  0x47   : > { %p2548_p11 = pneg %p2547_p10 }
  0x49   : > { %p2555_p2 = pnand %p2554_p13, %p2548_p11 }
  0x4b   : > { %2558 = shalt.err (!%p2555_p2)
}
  0x4c   : > { %2314 = dma.hbm_to_vmem [thread:$0]  (!%p2762_p6), %s3110_s6, 1536, %s323_s27, [#allocation12], %s3114_s24, %s3114_s24, %s3115_s25  }
  0x4d   : > { %s1894_s19 = sadd.s32 4294967294, %s2663_s12   ;;  %s2838_s22 = sadd.s32 1, %s2663_s12  }
  0x4e   : > { %s35_s20 = sadd.s32 1, %s2659_s11  ;;  %s32_s18 = ssub.s32 %s2663_s12, %s2838_s22 }
  0x4f   : > { %p42_p7 = scmp.ne.s32.totalorder %s2659_s11, %s2655_s10  ;;  %p33_p5 = scmp.eq.s32.totalorder %s32_s18, 0 }
  0x50   : > { %p43_p8 = scmp.eq.s32.totalorder %s2663_s12, 0  ;;  %p48_p9 = scmp.ne.s32.totalorder %s2655_s10, %s2651_s30 }
  0x51   : > { %p245_p10 = scmp.eq.s32.totalorder %s2748_s15, 1  ;;  %p251_p0 = scmp.eq.s32.totalorder %s1894_s19, 1 }
  0x52   : > { %s2850_s23 = scalar_select %p33_p5, %s2659_s11, %s35_s20  }
  0x53   : > { %p44_p11 = por %p43_p8, %p42_p7  ;;  %p2854_p12 = por %p3116_p1, %p48_p9 }
  0x54   : > { %p2858_p6 = por %p245_p10, %p42_p7  ;;  %p2328_p13 = scmp.lt.s32.totalorder %s2663_s12, 2 }
  0x55   : > { %s3129_s26 = scalar_select %p2854_p12, 1, 0 }
  0x56   : > { %s3130_s27 = scalar_select %p2858_p6, 1, 0 }
  0x57   : > { %s342_s28 = sand.u32 1, %s2659_s11   ;;  %p2864_p2 = por %p251_p0, %p48_p9 }
  0x58   : > { %s2271_s29 = smul.u32 48, %s342_s28  ;;  %p2868_p5 = pnand %p2328_p13, %p44_p11 }
  0x59   : > { %s3131_s21 = scalar_select %p2864_p2, 1, 0 }
  0x5a   : > { %s2272_s14 = smul.u32 768, %s2663_s12  ;;  %s346_s19 = scalar_lea.vmem [#allocation2], %s2271_s29 }
  0x5b   : > { %s353_s24 = sshll.u32 %s346_s19, 4  ;;  %s2880_s25 = scalar_lea.sflag [#allocation3], %s342_s28  ;;  %s2878_s24 = int_to_ptr.vmem [resolvable:$true] %s353_s24 }
  0x5c   : > { %s2876_s18 = scalar_lea.hbm %s3104_s0, %s2272_s14  ;;  %p2561_p8 = pneg %p2868_p5 }
  0x5d   : > { %s2559_s2 = scalar_lea.hbm %s2876_s18, 768  ;;  %s2564_s14 = scalar_lea.hbm %s3104_s0, 1536 }
  0x5e   : > { %p2560_p7 = scmp.ne.s32.totalorder %s2876_s18, %s2559_s2  ;;  %p2565_p11 = scmp.lt.s32.totalorder %s2876_s18, %s3104_s0 }
  0x5f   : > { %p2566_p0 = scmp.lt.s32.totalorder %s2564_s14, %s2559_s2 }
  0x60   : > { %p2562_p9 = pnand %p2561_p8, %p2560_p7 }
  0x61   : > { %p2567_p13 = por %p2566_p0, %p2565_p11 }
  0x62   : > { %p2563_p10 = pneg %p2562_p9 }
  0x64   : > { %p2568_p4 = pnand %p2567_p13, %p2563_p10 }
  0x66   : > { %2571 = shalt.err (!%p2568_p4)
}
  0x67   : > { %s2572_s28 = scalar_lea.vmem %s2878_s24, 768  ;;  %s2672_s29 = smov [#allocation2]  }
  0x68   : > { %p2573_p1 = scmp.ne.s32.totalorder %s2878_s24, %s2572_s28  ;;  %s2577_s19 = sshll.u32 %s2672_s29, 4  ;;  %s2578_s19 = int_to_ptr.vmem [resolvable:$false] %s2577_s19 }
  0x69   : > { %s2579_s3 = scalar_lea.vmem %s2578_s19, 1536  ;;  %p2580_p9 = scmp.lt.s32.totalorder %s2878_s24, %s2578_s19 }
  0x6a   : > { %p2575_p2 = pnand %p2573_p1, %p2561_p8  ;;  %p2581_p6 = scmp.lt.s32.totalorder %s2579_s3, %s2572_s28 }
  0x6c   : > { %p2576_p7 = pneg %p2575_p2  ;;  %p2582_p12 = por %p2581_p6, %p2580_p9 }
  0x6e   : > { %p2583_p3 = pnand %p2582_p12, %p2576_p7 }
  0x70   : > { %2586 = shalt.err (!%p2583_p3)
}
  0x71   : > { %s3133_s2 = smov 8   ;;  %s3134_s4 = smov 128  }
  0x72   : > { %2318 = dma.hbm_to_vmem [thread:$0]  (!%p2868_p5), %s2876_s18, 768, %s2878_s24, %s2880_s25, %s3134_s4, %s3134_s4, %s3133_s2  }
  0x73   : > { %p3135_p1 = scmp.ne.s32.totalorder %s3123_s16, 0 }
  0x74   : > { %s2907_s14 = sand.u32 (!%p3135_p1), 1, %s2655_s10   ;;  %p3136_p3 = scmp.ne.s32.totalorder (!%p3135_p1), %s3129_s26, 0 }
  0x75   : > { %373 = sbr.rel (%p3135_p1) target bundleno = 1377 (0x561), region = 56  ;;  %s376_s20 = scalar_lea.sflag (!%p3135_p1), [#allocation3], %s2907_s14 }
  0x76   : > { %s2273_s17 = smul.u32 (!%p3135_p1), 48, %s2907_s14 }
  0x78   : > { %s379_s13 = scalar_lea.vmem (!%p3135_p1), [#allocation2], %s2273_s17 }
  0x7a   : > { %2630 = dma.done.wait (%p3136_p3), %s376_s20, 768  }
  0x7b   : > { %2632 = vsyncadd (%p3136_p3), %s376_s20, 4294966528  ;;  %p3137_p4 = scmp.eq.s32.totalorder %s2748_s15, 0 }
  0x7d   : > { %2634 = dma.done.wait (%p3137_p4), [#allocation6], 2048   ;;  %p3138_p12 = pmov %p3137_p4 }
  0x7e   : > { %p3139_p6 = pmov %p3137_p4 }
  0x7f   : > { %2636 = vsyncadd (%p3138_p12), [#allocation6], 4294965248 }
  0x80   : > { %2638 = dma.done.wait (%p3139_p6), [#allocation9], 1792   ;;  %p3140_p2 = pmov %p3137_p4 }
  0x82   : > { %2640 = vsyncadd (%p3140_p2), [#allocation9], 4294965504  ;;  %p3141_p5 = pmov %p3140_p2 }
  0x83   : > { %p3142_p8 = pmov %p3140_p2 }
  0x84   : > { %2642 = dma.done.wait (%p3141_p5), [#allocation12], 1536  }
  0x85   : > { %2644 = vsyncadd (%p3142_p8), [#allocation12], 4294965760  ;;  %vm450_vm0 = vcmask 130048   ;;  %v449_v0 = vld [vmem:[%s379_s13 + $0x28] sm:$0xff]  ;;  %v448_v1 = vld [vmem:[%s379_s13 + $0x20] sm:$0xff]  ;;  %vm477_vm1 = vcmask 392192  }
  0x86   : > { %v447_v2 = vld [vmem:[%s379_s13 + $0x18] sm:$0xff]  ;;  %v466_v3 = vsel %vm450_vm0, %v449_v0, 0.0  ;;  %v446_v5 = vld [vmem:[%s379_s13 + $0x10] sm:$0xff]  ;;  %v463_v6 = vsel %vm450_vm0, %v448_v1, 0.0  ;;  %v445_v8 = vld [vmem:[%s379_s13 + $0x8] sm:$0xff]  ;;  %vm623_vm2 = vcmask 261120  }
  0x87   : > { %v460_v4 = vsel %vm450_vm0, %v447_v2, 0.0  ;;  %467 = vadd.xlane.f32.xlu0 %v466_v3  ;;  %v457_v7 = vsel %vm450_vm0, %v446_v5, 0.0  ;;  %v444_v9 = vld [vmem:[%s379_s13] sm:$0xff]  ;;  %v454_v10 = vsel %vm450_vm0, %v445_v8, 0.0  ;;  %v470_v19 = vld [vmem:[#allocation5 + $0x8] sm:$0xff]  ;;  %v472_v23 = vld [vmem:[#allocation5 + $0x18] sm:$0xff] }
  0x88   : > { %461 = vadd.xlane.f32.xlu1 %v460_v4  ;;  %v451_v11 = vsel %vm450_vm0, %v444_v9, 0.0  ;;  %v469_v12 = vld [vmem:[#allocation5] sm:$0xff]  ;;  %v786_v20 = vld [vmem:[#allocation10 + $0x8] sm:$0xff]  ;;  %v471_v21 = vld [vmem:[#allocation5 + $0x10] sm:$0xff]  ;;  %v2673_v26 = vmov 0   ;;  %p439_p10 = scmp.lt.s32.totalorder %s2748_s15, 1 }
  0x89   : > { %2111 = vmatprep.mubr.msk.f32.mxu0 %vm477_vm1, %v469_v12  ;;  %v785_v22 = vld [vmem:[#allocation10] sm:$0xff]  ;;  %v900_v25 = vld [vmem:[#allocation11] sm:$0xff]  ;;  %2377 = vset.pattern.permute.xlu1 %v2673_v26  ;;  %vm579_vm3 = vcmask 7168   ;;  %v901_v62 = vld [vmem:[#allocation11 + $0x8] sm:$0xff]  ;;  %vm1621_vm4 = vcmask 785408   ;;  %s438_s13 = scalar_lea.vmem [#allocation13], %s2273_s17 }
  0x8a   : > { %v611_v24 = vld [vmem:[#allocation8] sm:$0xff]  ;;  %2378 = vset.pattern.permute.xlu0 %v2673_v26  ;;  %s440_s16 = scalar_select %p439_p10, %s2748_s15, 1  ;;  %v905_v3 = vld [vmem:[#allocation11 + $0x28] sm:$0xff]  ;;  %v911_v12 = vld [vmem:[#allocation11 + $0x58] sm:$0xff] }
  0x8b   : > { %464 = vadd.xlane.f32.xlu0 %v463_v6  ;;  %2125 = vmatprep.mubr.msk.f32.mxu1 %vm623_vm2, %v611_v24  ;;  %v902_v63 = vld [vmem:[#allocation11 + $0x10] sm:$0xff]  ;;  %v908_v6 = vld [vmem:[#allocation11 + $0x40] sm:$0xff]  ;;  %p3143_p0 = scmp.ne.s32.totalorder %s3130_s27, 0  ;;  %s2674_s28 = smov [#allocation13]  }
  0x8c   : > { %458 = vadd.xlane.f32.xlu1 %v457_v7  ;;  %s1996_s24 = sshll.u32 %s440_s16, 5  ;;  %v906_v4 = vld [vmem:[#allocation11 + $0x30] sm:$0xff]  ;;  %v909_v7 = vld [vmem:[#allocation11 + $0x48] sm:$0xff]  ;;  %v621_v24 = vld [vmem:[#allocation8 + $0x50] sm:$0xff]  ;;  %s1761_s16 = sshll.u32 %s438_s13, 4  ;;  %s3053_s16 = int_to_ptr.vmem [resolvable:$true] %s1761_s16 }
  0x8d   : > { %s443_s18 = scalar_lea.vmem %s3105_s1, %s1996_s24  ;;  %v599_v26 = vld [vmem:[#allocation7] sm:$0xff]  ;;  %s2274_s24 = smul.u32 768, %s2748_s15 }
  0x8e   : > { %v474_v27 = vld [vmem:[%s443_s18 + $0x8] sm:$0xff]  ;;  %v473_v29 = vld [vmem:[%s443_s18] sm:$0xff]  ;;  %v476_v32 = vld [vmem:[%s443_s18 + $0x18] sm:$0xff]  ;;  %s1748_s15 = scalar_lea.sflag [#allocation4], %s2907_s14  ;;  %s2591_s29 = sshll.u32 %s2674_s28, 4  ;;  %s2592_s29 = int_to_ptr.vmem [resolvable:$false] %s2591_s29 }
  0x8f   : > { %455 = vadd.xlane.f32.xlu0 %v454_v10  ;;  %v475_v35 = vld [vmem:[%s443_s18 + $0x10] sm:$0xff]  ;;  %s3060_s26 = scalar_lea.hbm %s3113_s9, %s2274_s24  ;;  %s2587_s18 = scalar_lea.vmem %s3053_s16, 768 }
  0x90   : > { %452 = vadd.xlane.f32.xlu1 %v451_v11  ;;  %p2588_p11 = scmp.ne.s32.totalorder %s3053_s16, %s2587_s18  ;;  %s2593_s19 = scalar_lea.vmem %s2592_s29, 1536 }
  0x91   : > { %p2594_p9 = scmp.lt.s32.totalorder %s3053_s16, %s2592_s29  ;;  %p2595_p1 = scmp.lt.s32.totalorder %s2593_s19, %s2587_s18 }
  0x92   : > { %p2589_p13 = pnand %p2588_p11, %p3143_p0 }
  0x93   : > { %p2596_p3 = por %p2595_p1, %p2594_p9 }
  0x94   : > { %p2590_p7 = pneg %p2589_p13 }
  0x96   : > { %p2597_p4 = pnand %p2596_p3, %p2590_p7 }
 0x110   : > { %v468_v13 = vpop.xlane.xlu0 %467 }
 0x111   : > { %v462_v14 = vpop.xlane.xlu1 %461  ;;  %2099 = vmatprep.subr.mxu0 %v468_v13 }
 0x112   : > { %2100 = vmatpush3.msra.mxu0 %v468_v13 }
 0x114   : > { %v465_v15 = vpop.xlane.xlu0 %464 }
 0x115   : > { %v459_v16 = vpop.xlane.xlu1 %458  ;;  %2101 = vmatprep.subr.mxu0 %v465_v15 }
 0x116   : > { %2102 = vmatpush3.msra.mxu0 %v465_v15  ;;  %v612_v15 = vld [vmem:[#allocation8 + $0x8] sm:$0xff] }
 0x117   : > { %2103 = vmatprep.subr.mxu0 %v462_v14 }
 0x118   : > { %2104 = vmatpush3.msra.mxu0 %v462_v14  ;;  %v456_v17 = vpop.xlane.xlu0 %455 }
 0x119   : > { %2105 = vmatprep.subr.mxu0 %v459_v16  ;;  %v453_v18 = vpop.xlane.xlu1 %452 }
 0x11a   : > { %2106 = vmatpush3.msra.mxu0 %v459_v16  ;;  %v613_v16 = vld [vmem:[#allocation8 + $0x10] sm:$0xff] }
 0x11b   : > { %2107 = vmatprep.subr.mxu0 %v456_v17 }
 0x11c   : > { %2108 = vmatpush3.msra.mxu0 %v456_v17  ;;  %v614_v17 = vld [vmem:[#allocation8 + $0x18] sm:$0xff] }
 0x11d   : > { %2109 = vmatprep.subr.mxu0 %v453_v18 }
 0x11e   : > { %2110 = vmatpush3.msra.mxu0 %v453_v18  ;;  %v615_v18 = vld [vmem:[#allocation8 + $0x20] sm:$0xff] }
 0x11f   : > { %2112 = vmatmul.mubr.msk.f32.vlgmr.msra.gmra.mxu0 %vm477_vm1, %v470_v19  ;;  %2143 = vmatprep.subr.mxu0 %v786_v20  ;;  %v616_v19 = vld [vmem:[#allocation8 + $0x28] sm:$0xff] }
 0x120   : > { %2114 = vmatprep.mubr.msk.f32.mxu0 %vm477_vm1, %v471_v21  ;;  %2144 = vmatpush3.msra.mxu0 %v786_v20  ;;  %v617_v20 = vld [vmem:[#allocation8 + $0x30] sm:$0xff]  ;;  %v618_v21 = vld [vmem:[#allocation8 + $0x38] sm:$0xff] }
 0x121   : > { %2145 = vmatprep.subr.mxu0 %v785_v22 }
 0x122   : > { %2146 = vmatpush3.msra.mxu0 %v785_v22  ;;  %v619_v22 = vld [vmem:[#allocation8 + $0x40] sm:$0xff] }
 0x123   : > { %2115 = vmatmul.mubr.msk.f32.gmra.mxu0 %vm477_vm1, %v472_v23  ;;  %v620_v23 = vld [vmem:[#allocation8 + $0x48] sm:$0xff] }
 0x124   : > { %2147 = vmatprep.mubr.msk.f32.mxu0 %vm450_vm0, %v444_v9  ;;  %v910_v9 = vld [vmem:[#allocation11 + $0x50] sm:$0xff] }
 0x127   : > { %2148 = vmatmul.mubr.msk.f32.vlgmr.msra.gmra.mxu0 %vm450_vm0, %v445_v8 }
 0x128   : > { %2150 = vmatprep.mubr.msk.f32.mxu0 %vm450_vm0, %v446_v5  ;;  %v907_v5 = vld [vmem:[#allocation11 + $0x38] sm:$0xff] }
 0x12b   : > { %2151 = vmatmul.mubr.msk.f32.gmra.mxu0 %vm450_vm0, %v447_v2  ;;  %v904_v2 = vld [vmem:[#allocation11 + $0x20] sm:$0xff] }
 0x12c   : > { %2153 = vmatprep.mubr.msk.f32.mxu0 %vm450_vm0, %v448_v1  ;;  %v903_v1 = vld [vmem:[#allocation11 + $0x18] sm:$0xff] }
 0x12f   : > { %2154 = vmatmul.mubr.msk.f32.gmra.mxu0 %vm450_vm0, %v449_v0 }
 0x130   : > { %2168 = vmatprep.mubr.msk.f32.mxu0 %vm477_vm1, %v900_v25  ;;  %v622_v25 = vld [vmem:[#allocation8 + $0x58] sm:$0xff] }
 0x1df   : > { %v2113_v28 = vpop.f32.mrf.mxu0 }
 0x1e0   : > { %v2952_v30 = vadd.f32 %v2113_v28, %v474_v27  ;;  %v600_v27 = vld [vmem:[#allocation7 + $0x8] sm:$0xff]  ;;  %v601_v28 = vld [vmem:[#allocation7 + $0x10] sm:$0xff] }
 0x1e1   : > { %v556_v31 = vpop.f32.mrf.mxu0 }
 0x1e2   : > { %v2954_v33 = vadd.f32 %v556_v31, %v473_v29  ;;  %v576_v36 = vmul.f32 %v2952_v30, %v2952_v30  ;;  %v602_v29 = vld [vmem:[#allocation7 + $0x18] sm:$0xff]  ;;  %v604_v31 = vld [vmem:[#allocation7 + $0x28] sm:$0xff] }
 0x1e3   : > { %v2116_v34 = vpop.f32.mrf.mxu0 }
 0x1e4   : > { %v575_v37 = vmul.f32 %v2954_v33, %v2954_v33  ;;  %v572_v38 = vadd.f32 %v2116_v34, %v476_v32  ;;  %v581_v43 = vsel %vm579_vm3, %v576_v36, 0.0  ;;  %v605_v32 = vld [vmem:[#allocation7 + $0x30] sm:$0xff]  ;;  %v607_v34 = vld [vmem:[#allocation7 + $0x40] sm:$0xff] }
 0x1e5   : > { %v566_v39 = vpop.f32.mrf.mxu0  ;;  %v609_v36 = vld [vmem:[#allocation7 + $0x50] sm:$0xff] }
 0x1e6   : > { %v580_v40 = vsel %vm579_vm3, %v575_v37, 0.0  ;;  %v567_v41 = vadd.f32 %v566_v39, %v475_v35  ;;  %v578_v44 = vmul.f32 %v572_v38, %v572_v38  ;;  %v608_v35 = vld [vmem:[#allocation7 + $0x48] sm:$0xff]  ;;  %v610_v37 = vld [vmem:[#allocation7 + $0x58] sm:$0xff] }
 0x1e7   : > { %v2149_v42 = vpop.f32.mrf.mxu0  ;;  %v582_v46 = vadd.f32 %v581_v43, %v580_v40 }
 0x1e8   : > { %v577_v45 = vmul.f32 %v567_v41, %v567_v41  ;;  %v585_v51 = vsel %vm579_vm3, %v578_v44, 0.0 }
 0x1e9   : > { %v871_v47 = vpop.f32.mrf.mxu0 }
 0x1ea   : > { %v583_v48 = vsel %vm579_vm3, %v577_v45, 0.0 }
 0x1eb   : > { %v584_v49 = vadd.f32 %v583_v48, %v582_v46  ;;  %v2152_v50 = vpop.f32.mrf.mxu0 }
 0x1ed   : > { %v586_v52 = vadd.f32 %v585_v51, %v584_v49  ;;  %v881_v53 = vpop.f32.mrf.mxu0 }
 0x1ef   : > { %v587_v54 = vrot.slane %v586_v52, 4  ;;  %v2155_v55 = vpop.f32.mrf.mxu0 }
 0x1f0   : > { %2156 = vmatprep.subr.mxu0 %v2155_v55 }
 0x1f1   : > { %v588_v56 = vadd.f32 %v587_v54, %v586_v52  ;;  %v891_v57 = vpop.f32.mrf.mxu0  ;;  %2157 = vmatpush3.msra.mxu0 %v2155_v55 }
 0x1f2   : > { %2158 = vmatprep.subr.mxu0 %v891_v57 }
 0x1f3   : > { %v589_v58 = vrot.slane %v588_v56, 2  ;;  %2159 = vmatpush3.msra.mxu0 %v891_v57 }
 0x1f4   : > { %2160 = vmatprep.subr.mxu0 %v2152_v50 }
 0x1f5   : > { %v590_v59 = vadd.f32 %v589_v58, %v588_v56  ;;  %2161 = vmatpush3.msra.mxu0 %v2152_v50 }
 0x1f6   : > { %2162 = vmatprep.subr.mxu0 %v881_v53 }
 0x1f7   : > { %v591_v60 = vrot.slane %v590_v59, 1  ;;  %2163 = vmatpush3.msra.mxu0 %v881_v53 }
 0x1f8   : > { %2164 = vmatprep.subr.mxu0 %v2149_v42 }
 0x1f9   : > { %v592_v61 = vadd.f32 %v591_v60, %v590_v59  ;;  %2165 = vmatpush3.msra.mxu0 %v2149_v42 }
 0x1fa   : > { %2166 = vmatprep.subr.mxu0 %v871_v47 }
 0x1fb   : > { %v593_v0 = vadd.f32 1e-12, %v592_v61  ;;  %2167 = vmatpush3.msra.mxu0 %v871_v47 }
 0x1fc   : > { %2169 = vmatmul.mubr.msk.f32.vlgmr.msra.gmra.mxu0 %vm477_vm1, %v901_v62 }
 0x1fd   : > { %2379 = vrsqrt.f32 %v593_v0  ;;  %2171 = vmatprep.mubr.msk.f32.mxu0 %vm477_vm1, %v902_v63 }
 0x200   : > { %2172 = vmatmul.mubr.msk.f32.gmra.mxu0 %vm477_vm1, %v903_v1 }
 0x201   : > { %2174 = vmatprep.mubr.msk.f32.mxu0 %vm477_vm1, %v904_v2 }
 0x204   : > { %2175 = vmatmul.mubr.msk.f32.gmra.mxu0 %vm477_vm1, %v905_v3 }
 0x205   : > { %2177 = vmatprep.mubr.msk.f32.mxu0 %vm477_vm1, %v906_v4 }
 0x208   : > { %2178 = vmatmul.mubr.msk.f32.gmra.mxu0 %vm477_vm1, %v907_v5 }
 0x209   : > { %2180 = vmatprep.mubr.msk.f32.mxu0 %vm477_vm1, %v908_v6 }
 0x20a   : > { %v2380_v8 = vpop.eup %2379 }
 0x20b   : > { %v598_v10 = vmul.f32 %v2380_v8, %v572_v38  ;;  %v597_v11 = vmul.f32 %v2380_v8, %v567_v41  ;;  %v596_v13 = vmul.f32 %v2380_v8, %v2952_v30  ;;  %v595_v14 = vmul.f32 %v2380_v8, %v2954_v33  ;;  %v603_v30 = vld [vmem:[#allocation7 + $0x20] sm:$0xff]  ;;  %v606_v33 = vld [vmem:[#allocation7 + $0x38] sm:$0xff] }
 0x20c   : > { %2181 = vmatmul.mubr.msk.f32.gmra.mxu0 %vm477_vm1, %v909_v7 }
 0x20d   : > { %2117 = vmatprep.subr.mxu1 %v598_v10  ;;  %2183 = vmatprep.mubr.msk.f32.mxu0 %vm477_vm1, %v910_v9 }
 0x20e   : > { %2118 = vmatpush3.msra.mxu1 %v598_v10 }
 0x20f   : > { %2119 = vmatprep.subr.mxu1 %v597_v11 }
 0x210   : > { %2120 = vmatpush3.msra.mxu1 %v597_v11  ;;  %2184 = vmatmul.mubr.msk.f32.gmra.mxu0 %vm477_vm1, %v911_v12  ;;  %v1451_v12 = vld [vmem:[%s3111_s7 + $0x8] sm:$0xff] }
 0x211   : > { %2121 = vmatprep.subr.mxu1 %v596_v13 }
 0x212   : > { %2122 = vmatpush3.msra.mxu1 %v596_v13 }
 0x213   : > { %2123 = vmatprep.subr.mxu1 %v595_v14 }
 0x214   : > { %2124 = vmatpush3.msra.mxu1 %v595_v14 }
 0x215   : > { %2126 = vmatmul.mubr.msk.f32.vlgmr.msra.gmra.mxu1 %vm623_vm2, %v612_v15  ;;  %2186 = vmatprep.subr.mxu1 %v598_v10 }
 0x216   : > { %2187 = vmatpush3.msra.mxu1 %v598_v10  ;;  %2128 = vmatprep.mubr.msk.f32.mxu1 %vm623_vm2, %v613_v16  ;;  %v1453_v10 = vld [vmem:[%s3111_s7 + $0x18] sm:$0xff] }
 0x217   : > { %2188 = vmatprep.subr.mxu1 %v597_v11  ;;  %2212 = vmatprep.subr.mxu0 %v1453_v10 }
 0x218   : > { %2189 = vmatpush3.msra.mxu1 %v597_v11  ;;  %2213 = vmatpush3.msra.mxu0 %v1453_v10  ;;  %v1452_v11 = vld [vmem:[%s3111_s7 + $0x10] sm:$0xff] }
 0x219   : > { %2129 = vmatmul.mubr.msk.f32.gmra.mxu1 %vm623_vm2, %v614_v17  ;;  %2190 = vmatprep.subr.mxu1 %v596_v13 }
 0x21a   : > { %2191 = vmatpush3.msra.mxu1 %v596_v13  ;;  %2131 = vmatprep.mubr.msk.f32.mxu1 %vm623_vm2, %v615_v18  ;;  %v1450_v13 = vld [vmem:[%s3111_s7] sm:$0xff] }
 0x21b   : > { %2192 = vmatprep.subr.mxu1 %v595_v14  ;;  %2214 = vmatprep.subr.mxu0 %v1452_v11 }
 0x21c   : > { %2193 = vmatpush3.msra.mxu1 %v595_v14  ;;  %2215 = vmatpush3.msra.mxu0 %v1452_v11 }
 0x21d   : > { %2132 = vmatmul.mubr.msk.f32.gmra.mxu1 %vm623_vm2, %v616_v19  ;;  %2216 = vmatprep.subr.mxu0 %v1451_v12 }
 0x21e   : > { %2134 = vmatprep.mubr.msk.f32.mxu1 %vm623_vm2, %v617_v20  ;;  %2217 = vmatpush3.msra.mxu0 %v1451_v12 }
 0x21f   : > { %2218 = vmatprep.subr.mxu0 %v1450_v13 }
 0x220   : > { %2219 = vmatpush3.msra.mxu0 %v1450_v13 }
 0x221   : > { %2135 = vmatmul.mubr.msk.f32.gmra.mxu1 %vm623_vm2, %v618_v21 }
 0x222   : > { %2137 = vmatprep.mubr.msk.f32.mxu1 %vm623_vm2, %v619_v22 }
 0x225   : > { %2138 = vmatmul.mubr.msk.f32.gmra.mxu1 %vm623_vm2, %v620_v23 }
 0x226   : > { %2140 = vmatprep.mubr.msk.f32.mxu1 %vm623_vm2, %v621_v24 }
 0x229   : > { %2141 = vmatmul.mubr.msk.f32.gmra.mxu1 %vm623_vm2, %v622_v25 }
 0x22a   : > { %2194 = vmatprep.mubr.msk.f32.mxu1 %vm623_vm2, %v599_v26 }
 0x22d   : > { %2195 = vmatmul.mubr.msk.f32.vlgmr.msra.gmra.mxu1 %vm623_vm2, %v600_v27 }
 0x22e   : > { %2197 = vmatprep.mubr.msk.f32.mxu1 %vm623_vm2, %v601_v28 }
 0x231   : > { %2198 = vmatmul.mubr.msk.f32.gmra.mxu1 %vm623_vm2, %v602_v29 }
 0x232   : > { %2200 = vmatprep.mubr.msk.f32.mxu1 %vm623_vm2, %v603_v30 }
 0x235   : > { %2201 = vmatmul.mubr.msk.f32.gmra.mxu1 %vm623_vm2, %v604_v31 }
 0x236   : > { %2203 = vmatprep.mubr.msk.f32.mxu1 %vm623_vm2, %v605_v32 }
 0x239   : > { %2204 = vmatmul.mubr.msk.f32.gmra.mxu1 %vm623_vm2, %v606_v33 }
 0x23a   : > { %2206 = vmatprep.mubr.msk.f32.mxu1 %vm623_vm2, %v607_v34 }
 0x23d   : > { %2207 = vmatmul.mubr.msk.f32.gmra.mxu1 %vm623_vm2, %v608_v35 }
 0x23e   : > { %2209 = vmatprep.mubr.msk.f32.mxu1 %vm623_vm2, %v609_v36 }
 0x241   : > { %2210 = vmatmul.mubr.msk.f32.gmra.mxu1 %vm623_vm2, %v610_v37 }
 0x2bc   : > { %v2170_v16 = vpop.f32.mrf.mxu0 }
 0x2bd   : > { %v1020_v28 = vadd.f32 0.5, %v2170_v16 }
 0x2be   : > { %v1014_v18 = vpop.f32.mrf.mxu0 }
 0x2bf   : > { %v1015_v29 = vadd.f32 0.5, %v1014_v18 }
 0x2c0   : > { %v2173_v20 = vpop.f32.mrf.mxu0 }
 0x2c1   : > { %v1030_v35 = vadd.f32 0.5, %v2173_v20 }
 0x2c2   : > { %v1024_v22 = vpop.f32.mrf.mxu0 }
 0x2c4   : > { %v2176_v25 = vpop.f32.mrf.mxu0 }
 0x2c6   : > { %v1034_v30 = vpop.f32.mrf.mxu0 }
 0x2c8   : > { %v2179_v36 = vpop.f32.mrf.mxu0 }
 0x2d5   : > { %v2127_v38 = vpop.f32.mrf.mxu1 }
 0x2d6   : > { %1313 = vperm.xlu1 %2377, %v2127_v38  }
 0x2d7   : > { %v726_v39 = vpop.f32.mrf.mxu1 }
 0x2d9   : > { %v2130_v40 = vpop.f32.mrf.mxu1 }
 0x2da   : > { %1308 = vperm.xlu1 %2377, %v726_v39   ;;  %v1025_v39 = vadd.f32 0.5, %v1024_v22 }
 0x2db   : > { %v736_v41 = vpop.f32.mrf.mxu1 }
 0x2dd   : > { %v2133_v42 = vpop.f32.mrf.mxu1 }
 0x2de   : > { %1323 = vperm.xlu1 %2377, %v2130_v40   ;;  %1333 = vperm.xlu0 %2378, %v2133_v42  }
 0x2df   : > { %v746_v43 = vpop.f32.mrf.mxu1 }
 0x2e1   : > { %v2136_v44 = vpop.f32.mrf.mxu1 }
 0x2e2   : > { %1318 = vperm.xlu1 %2377, %v736_v41   ;;  %1343 = vperm.xlu0 %2378, %v2136_v44  }
 0x2e3   : > { %v756_v45 = vpop.f32.mrf.mxu1 }
 0x2e5   : > { %v2139_v46 = vpop.f32.mrf.mxu1 }
 0x2e6   : > { %1328 = vperm.xlu1 %2377, %v746_v43  }
 0x2e7   : > { %v766_v47 = vpop.f32.mrf.mxu1 }
 0x2e9   : > { %v2142_v48 = vpop.f32.mrf.mxu1 }
 0x2ea   : > { %1338 = vperm.xlu1 %2377, %v756_v45   ;;  %v1040_v45 = vadd.f32 0.5, %v2176_v25 }
 0x2eb   : > { %v776_v49 = vpop.f32.mrf.mxu1 }
 0x2ed   : > { %v2196_v50 = vpop.f32.mrf.mxu1 }
 0x2ee   : > { %v1181_v51 = vadd.f32 1.0, %v2196_v50  ;;  %1348 = vperm.xlu1 %2377, %v766_v47  }
 0x2ef   : > { %v1175_v52 = vpop.f32.mrf.mxu1 }
 0x2f0   : > { %v1176_v53 = vadd.f32 1.0, %v1175_v52 }
 0x2f1   : > { %v2199_v54 = vpop.f32.mrf.mxu1 }
 0x2f2   : > { %v1191_v55 = vadd.f32 1.0, %v2199_v54  ;;  %1241 = vperm.xlu1 %2377, %v1181_v51   ;;  %1236 = vperm.xlu0 %2378, %v1176_v53   ;;  %v1050_v54 = vadd.f32 0.5, %v2179_v36 }
 0x2f3   : > { %v1185_v56 = vpop.f32.mrf.mxu1 }
 0x2f4   : > { %v1186_v60 = vadd.f32 1.0, %v1185_v56 }
 0x2f5   : > { %v2202_v57 = vpop.f32.mrf.mxu1 }
 0x2f6   : > { %1251 = vperm.xlu1 %2377, %v1191_v55   ;;  %1353 = vperm.xlu0 %2378, %v2139_v46   ;;  %v1201_v58 = vadd.f32 1.0, %v2202_v57  ;;  %v1044_v46 = vpop.f32.mrf.mxu0 }
 0x2f7   : > { %v1195_v59 = vpop.f32.mrf.mxu1 }
 0x2f8   : > { %v1196_v0 = vadd.f32 1.0, %v1195_v59  ;;  %v2182_v55 = vpop.f32.mrf.mxu0 }
 0x2f9   : > { %v2205_v61 = vpop.f32.mrf.mxu1 }
 0x2fa   : > { %1246 = vperm.xlu1 %2377, %v1186_v60   ;;  %1261 = vperm.xlu0 %2378, %v1201_v58   ;;  %v1211_v62 = vadd.f32 1.0, %v2205_v61  ;;  %v1045_v58 = vadd.f32 0.5, %v1044_v46  ;;  %v1060_v61 = vadd.f32 0.5, %v2182_v55 }
 0x2fb   : > { %v1205_v63 = vpop.f32.mrf.mxu1 }
 0x2fc   : > { %v1206_v4 = vadd.f32 1.0, %v1205_v63 }
 0x2fd   : > { %v2208_v1 = vpop.f32.mrf.mxu1 }
 0x2fe   : > { %1256 = vperm.xlu1 %2377, %v1196_v0   ;;  %1271 = vperm.xlu0 %2378, %v1211_v62   ;;  %v1221_v2 = vadd.f32 1.0, %v2208_v1 }
 0x2ff   : > { %v1215_v3 = vpop.f32.mrf.mxu1 }
 0x300   : > { %v1216_v7 = vadd.f32 1.0, %v1215_v3 }
 0x301   : > { %v2211_v5 = vpop.f32.mrf.mxu1 }
 0x302   : > { %1266 = vperm.xlu1 %2377, %v1206_v4   ;;  %1281 = vperm.xlu0 %2378, %v1221_v2   ;;  %v1231_v6 = vadd.f32 1.0, %v2211_v5  ;;  %v1054_v2 = vpop.f32.mrf.mxu0 }
 0x303   : > { %v1225_v8 = vpop.f32.mrf.mxu1 }
 0x304   : > { %v1226_v9 = vadd.f32 1.0, %v1225_v8  ;;  %v1055_v8 = vadd.f32 0.5, %v1054_v2  ;;  %v2185_v11 = vpop.f32.mrf.mxu0 }
 0x306   : > { %1276 = vperm.xlu1 %2377, %v1216_v7   ;;  %1291 = vperm.xlu0 %2378, %v1231_v6  }
 0x30a   : > { %1286 = vperm.xlu1 %2377, %v1226_v9   ;;  %1363 = vperm.xlu0 %2378, %v2142_v48   ;;  %v1035_v48 = vadd.f32 0.5, %v1034_v30 }
 0x30e   : > { %1358 = vperm.xlu1 %2377, %v776_v49  }
 0x351   : > { %v1314_v14 = vpop.permute.xlu1 %1313 }
 0x355   : > { %v1309_v15 = vpop.permute.xlu1 %1308 }
 0x359   : > { %v1324_v17 = vpop.permute.xlu1 %1323  ;;  %v1334_v23 = vpop.permute.xlu0 %1333 }
 0x35d   : > { %v1319_v19 = vpop.permute.xlu1 %1318  ;;  %v1344_v26 = vpop.permute.xlu0 %1343 }
 0x361   : > { %v1329_v21 = vpop.permute.xlu1 %1328 }
 0x365   : > { %v1339_v24 = vpop.permute.xlu1 %1338 }
 0x369   : > { %v3008_v27 = vpop.permute.xlu1 %1348 }
 0x36d   : > { %v1242_v31 = vpop.permute.xlu1 %1241  ;;  %v1237_v32 = vpop.permute.xlu0 %1236 }
 0x36e   : > { %v1295_v33 = vmul.f32 %v1242_v31, %v1020_v28  ;;  %v1294_v34 = vmul.f32 %v1237_v32, %v1015_v29 }
 0x370   : > { %v1367_v37 = vadd.f32 %v1314_v14, %v1295_v33  ;;  %v1366_v38 = vadd.f32 %v1309_v15, %v1294_v34  ;;  %v1064_v15 = vpop.f32.mrf.mxu0 }
 0x371   : > { %v1252_v40 = vpop.permute.xlu1 %1251  ;;  %v1354_v41 = vpop.permute.xlu0 %1353  ;;  %v1065_v29 = vadd.f32 0.5, %v1064_v15 }
 0x372   : > { %v1958_v42 = vmul.f32 -1.442695, %v1367_v37  ;;  %v1957_v43 = vmul.f32 -1.442695, %v1366_v38  ;;  %v1297_v44 = vmul.f32 %v1252_v40, %v1030_v35 }
 0x374   : > { %2381 = vpow2.f32 %v1958_v42  ;;  %v1369_v47 = vadd.f32 %v1324_v17, %v1297_v44  ;;  %v1070_v17 = vadd.f32 0.5, %v2185_v11 }
 0x375   : > { %2383 = vpow2.f32 %v1957_v43  ;;  %v1247_v49 = vpop.permute.xlu1 %1246  ;;  %v1262_v50 = vpop.permute.xlu0 %1261 }
 0x376   : > { %v1960_v51 = vmul.f32 -1.442695, %v1369_v47  ;;  %v1296_v52 = vmul.f32 %v1247_v49, %v1025_v39  ;;  %v1299_v53 = vmul.f32 %v1262_v50, %v1040_v45 }
 0x378   : > { %v1368_v56 = vadd.f32 %v1319_v19, %v1296_v52  ;;  %v1371_v57 = vadd.f32 %v1334_v23, %v1299_v53  ;;  %2385 = vpow2.f32 %v1960_v51 }
 0x379   : > { %v1257_v59 = vpop.permute.xlu1 %1256  ;;  %v1272_v60 = vpop.permute.xlu0 %1271 }
 0x37a   : > { %v1959_v62 = vmul.f32 -1.442695, %v1368_v56  ;;  %v1962_v63 = vmul.f32 -1.442695, %v1371_v57  ;;  %v1298_v0 = vmul.f32 %v1257_v59, %v1035_v48  ;;  %v1301_v1 = vmul.f32 %v1272_v60, %v1050_v54 }
 0x37c   : > { %2387 = vpow2.f32 %v1959_v62  ;;  %v1370_v3 = vadd.f32 %v1329_v21, %v1298_v0  ;;  %v1373_v4 = vadd.f32 %v1344_v26, %v1301_v1 }
 0x37d   : > { %2389 = vpow2.f32 %v1962_v63  ;;  %v1267_v5 = vpop.permute.xlu1 %1266  ;;  %v1282_v6 = vpop.permute.xlu0 %1281 }
 0x37e   : > { %v1961_v7 = vmul.f32 -1.442695, %v1370_v3  ;;  %v1300_v9 = vmul.f32 %v1267_v5, %v1045_v58  ;;  %v1303_v10 = vmul.f32 %v1282_v6, %v1060_v61  ;;  %v1964_v12 = vmul.f32 -1.442695, %v1373_v4  ;;  %v1615_v6 = vld [vmem:[%s3112_s8] sm:$0xff] }
 0x37f   : > { %2262 = vmatprep.mubr.msk.f32.mxu1 %vm1621_vm4, %v1615_v6 }
 0x380   : > { %2391 = vpow2.f32 %v1961_v7  ;;  %v1372_v13 = vadd.f32 %v1339_v24, %v1300_v9  ;;  %v1375_v14 = vadd.f32 %v1354_v41, %v1303_v10 }
 0x381   : > { %v2382_v16 = vpop.eup %2381  ;;  %v1277_v18 = vpop.permute.xlu1 %1276  ;;  %2393 = vpow2.f32 %v1964_v12 }
 0x382   : > { %v1292_v19 = vpop.permute.xlu0 %1291  ;;  %v2384_v20 = vpop.eup %2383  ;;  %v1415_v21 = vadd.f32 1.0, %v2382_v16  ;;  %v1963_v22 = vmul.f32 -1.442695, %v1372_v13  ;;  %v1302_v23 = vmul.f32 %v1277_v18, %v1055_v8  ;;  %v1966_v26 = vmul.f32 -1.442695, %v1375_v14 }
 0x383   : > { %v1414_v25 = vadd.f32 1.0, %v2384_v20  ;;  %v1305_v30 = vmul.f32 %v1292_v19, %v1070_v17  ;;  %v1616_v19 = vld [vmem:[%s3112_s8 + $0x8] sm:$0xff]  ;;  %v1617_v20 = vld [vmem:[%s3112_s8 + $0x10] sm:$0xff] }
 0x384   : > { %2395 = vrcp.f32 %v1415_v21  ;;  %v1374_v28 = vadd.f32 %v3008_v27, %v1302_v23  ;;  %v1618_v21 = vld [vmem:[%s3112_s8 + $0x18] sm:$0xff]  ;;  %v1620_v23 = vld [vmem:[%s3112_s8 + $0x28] sm:$0xff] }
 0x385   : > { %2397 = vrcp.f32 %v1414_v25  ;;  %v1287_v24 = vpop.permute.xlu1 %1286  ;;  %v2386_v32 = vpop.eup %2385 }
 0x386   : > { %v1364_v31 = vpop.permute.xlu0 %1363  ;;  %2399 = vpow2.f32 %v1963_v22  ;;  %v1965_v33 = vmul.f32 -1.442695, %v1374_v28  ;;  %v1304_v35 = vmul.f32 %v1287_v24, %v1065_v29  ;;  %v1417_v37 = vadd.f32 1.0, %v2386_v32  ;;  %v1619_v22 = vld [vmem:[%s3112_s8 + $0x20] sm:$0xff] }
 0x387   : > { %2401 = vpow2.f32 %v1966_v26  ;;  %v1377_v34 = vadd.f32 %v1364_v31, %v1305_v30 }
 0x388   : > { %2403 = vpow2.f32 %v1965_v33 }
 0x389   : > { %v2388_v36 = vpop.eup %2387  ;;  %v1968_v38 = vmul.f32 -1.442695, %v1377_v34  ;;  %v1359_v39 = vpop.permute.xlu1 %1358 }
 0x38a   : > { %v2390_v40 = vpop.eup %2389  ;;  %v1416_v41 = vadd.f32 1.0, %v2388_v36  ;;  %v1376_v42 = vadd.f32 %v1359_v39, %v1304_v35 }
 0x38b   : > { %2405 = vpow2.f32 %v1968_v38  ;;  %v1419_v44 = vadd.f32 1.0, %v2390_v40 }
 0x38c   : > { %2407 = vrcp.f32 %v1416_v41  ;;  %v1967_v27 = vmul.f32 -1.442695, %v1376_v42 }
 0x38d   : > { %v2392_v43 = vpop.eup %2391  ;;  %2409 = vrcp.f32 %v1417_v37 }
 0x38e   : > { %v1418_v45 = vadd.f32 1.0, %v2392_v43  ;;  %2411 = vpow2.f32 %v1967_v27  ;;  %v2394_v46 = vpop.eup %2393 }
 0x38f   : > { %v1421_v50 = vadd.f32 1.0, %v2394_v46 }
 0x390   : > { %2413 = vrcp.f32 %v1418_v45 }
 0x391   : > { %v2396_v47 = vpop.eup %2395  ;;  %2415 = vrcp.f32 %v1419_v44 }
 0x392   : > { %v2398_v48 = vpop.eup %2397 }
 0x393   : > { %v2400_v49 = vpop.eup %2399  ;;  %2220 = vmatprep.mubr.msk.f32.mxu0 %vm623_vm2, %v2398_v48 }
 0x394   : > { %v2402_v51 = vpop.eup %2401  ;;  %v1420_v52 = vadd.f32 1.0, %v2400_v49  ;;  %2221 = vmatmul.mubr.msk.f32.vlgmr.msra.gmra.mxu0 %vm623_vm2, %v2396_v47 }
 0x395   : > { %v2404_v53 = vpop.eup %2403  ;;  %v1423_v54 = vadd.f32 1.0, %v2402_v51 }
 0x396   : > { %2417 = vrcp.f32 %v1420_v52  ;;  %v1422_v55 = vadd.f32 1.0, %v2404_v53 }
 0x397   : > { %2419 = vrcp.f32 %v1421_v50 }
 0x398   : > { %v2406_v56 = vpop.eup %2405  ;;  %2421 = vrcp.f32 %v1422_v55 }
 0x399   : > { %v2408_v57 = vpop.eup %2407  ;;  %2423 = vrcp.f32 %v1423_v54  ;;  %v1425_v60 = vadd.f32 1.0, %v2406_v56 }
 0x39a   : > { %v2410_v58 = vpop.eup %2409  ;;  %2223 = vmatprep.mubr.msk.f32.mxu0 %vm623_vm2, %v2408_v57 }
 0x39b   : > { %v2412_v59 = vpop.eup %2411  ;;  %2224 = vmatmul.mubr.msk.f32.gmra.mxu0 %vm623_vm2, %v2410_v58 }
 0x39c   : > { %v1424_v61 = vadd.f32 1.0, %v2412_v59 }
 0x39d   : > { %v2414_v62 = vpop.eup %2413 }
 0x39e   : > { %v2416_v63 = vpop.eup %2415  ;;  %2425 = vrcp.f32 %v1424_v61  ;;  %2226 = vmatprep.mubr.msk.f32.mxu0 %vm623_vm2, %v2414_v62 }
 0x39f   : > { %2427 = vrcp.f32 %v1425_v60  ;;  %2227 = vmatmul.mubr.msk.f32.gmra.mxu0 %vm623_vm2, %v2416_v63 }
 0x3a3   : > { %v2418_v0 = vpop.eup %2417 }
 0x3a4   : > { %v2420_v1 = vpop.eup %2419  ;;  %2229 = vmatprep.mubr.msk.f32.mxu0 %vm623_vm2, %v2418_v0 }
 0x3a5   : > { %2230 = vmatmul.mubr.msk.f32.gmra.mxu0 %vm623_vm2, %v2420_v1  ;;  %v2422_v2 = vpop.eup %2421 }
 0x3a6   : > { %2232 = vmatprep.mubr.msk.f32.mxu0 %vm623_vm2, %v2422_v2  ;;  %v2424_v3 = vpop.eup %2423 }
 0x3a9   : > { %2233 = vmatmul.mubr.msk.f32.gmra.mxu0 %vm623_vm2, %v2424_v3 }
 0x3ab   : > { %v2426_v4 = vpop.eup %2425 }
 0x3ac   : > { %v2428_v5 = vpop.eup %2427  ;;  %2235 = vmatprep.mubr.msk.f32.mxu0 %vm623_vm2, %v2426_v4 }
 0x3ad   : > { %2236 = vmatmul.mubr.msk.f32.gmra.mxu0 %vm623_vm2, %v2428_v5 }
 0x454   : > { %v2222_v7 = vpop.f32.mrf.mxu0 }
 0x456   : > { %v1556_v8 = vpop.f32.mrf.mxu0 }
 0x45b   : > { %v2225_v9 = vpop.f32.mrf.mxu0 }
 0x45d   : > { %v1566_v10 = vpop.f32.mrf.mxu0 }
 0x45f   : > { %v2228_v11 = vpop.f32.mrf.mxu0 }
 0x461   : > { %v1576_v12 = vpop.f32.mrf.mxu0 }
 0x465   : > { %v2231_v13 = vpop.f32.mrf.mxu0 }
 0x467   : > { %v1586_v14 = vpop.f32.mrf.mxu0 }
 0x469   : > { %v2234_v15 = vpop.f32.mrf.mxu0 }
 0x46b   : > { %v1596_v16 = vpop.f32.mrf.mxu0 }
 0x46d   : > { %v2237_v17 = vpop.f32.mrf.mxu0 }
 0x46e   : > { %2238 = vmatprep.subr.mxu1 %v2237_v17 }
 0x46f   : > { %v1606_v18 = vpop.f32.mrf.mxu0  ;;  %2239 = vmatpush3.msra.mxu1 %v2237_v17 }
 0x470   : > { %2240 = vmatprep.subr.mxu1 %v1606_v18 }
 0x471   : > { %2241 = vmatpush3.msra.mxu1 %v1606_v18 }
 0x472   : > { %2242 = vmatprep.subr.mxu1 %v2234_v15 }
 0x473   : > { %2243 = vmatpush3.msra.mxu1 %v2234_v15 }
 0x474   : > { %2244 = vmatprep.subr.mxu1 %v1596_v16 }
 0x475   : > { %2245 = vmatpush3.msra.mxu1 %v1596_v16 }
 0x476   : > { %2246 = vmatprep.subr.mxu1 %v2231_v13 }
 0x477   : > { %2247 = vmatpush3.msra.mxu1 %v2231_v13 }
 0x478   : > { %2248 = vmatprep.subr.mxu1 %v1586_v14 }
 0x479   : > { %2249 = vmatpush3.msra.mxu1 %v1586_v14 }
 0x47a   : > { %2250 = vmatprep.subr.mxu1 %v2228_v11 }
 0x47b   : > { %2251 = vmatpush3.msra.mxu1 %v2228_v11 }
 0x47c   : > { %2252 = vmatprep.subr.mxu1 %v1576_v12 }
 0x47d   : > { %2253 = vmatpush3.msra.mxu1 %v1576_v12 }
 0x47e   : > { %2254 = vmatprep.subr.mxu1 %v2225_v9 }
 0x47f   : > { %2255 = vmatpush3.msra.mxu1 %v2225_v9 }
 0x480   : > { %2256 = vmatprep.subr.mxu1 %v1566_v10 }
 0x481   : > { %2257 = vmatpush3.msra.mxu1 %v1566_v10 }
 0x482   : > { %2258 = vmatprep.subr.mxu1 %v2222_v7 }
 0x483   : > { %2259 = vmatpush3.msra.mxu1 %v2222_v7 }
 0x484   : > { %2260 = vmatprep.subr.mxu1 %v1556_v8 }
 0x485   : > { %2261 = vmatpush3.msra.mxu1 %v1556_v8 }
 0x486   : > { %2263 = vmatmul.mubr.msk.f32.vlgmr.msra.gmra.mxu1 %vm1621_vm4, %v1616_v19 }
 0x487   : > { %2265 = vmatprep.mubr.msk.f32.mxu1 %vm1621_vm4, %v1617_v20 }
 0x48a   : > { %2266 = vmatmul.mubr.msk.f32.gmra.mxu1 %vm1621_vm4, %v1618_v21 }
 0x48b   : > { %2268 = vmatprep.mubr.msk.f32.mxu1 %vm1621_vm4, %v1619_v22 }
 0x48e   : > { %2269 = vmatmul.mubr.msk.f32.gmra.mxu1 %vm1621_vm4, %v1620_v23 }
 0x546   : > { %v2264_v25 = vpop.f32.mrf.mxu1 }
 0x547   : > { %v1988_v26 = vadd.f32 -1.0, %v2264_v25 }
 0x548   : > { %v1706_v28 = vpop.f32.mrf.mxu1 }
 0x549   : > { %1742 = vst.msk [vmem:[%s438_s13 + $0x8] sm:$0xff] %vm450_vm0, %v1988_v26  ;;  %v1987_v29 = vadd.f32 -1.0, %v1706_v28 }
 0x54a   : > { %v2267_v30 = vpop.f32.mrf.mxu1 }
 0x54b   : > { %1741 = vst.msk [vmem:[%s438_s13] sm:$0xff] %vm450_vm0, %v1987_v29  ;;  %v1990_v24 = vadd.f32 -1.0, %v2267_v30 }
 0x54c   : > { %v1716_v31 = vpop.f32.mrf.mxu1 }
 0x54d   : > { %1744 = vst.msk [vmem:[%s438_s13 + $0x18] sm:$0xff] %vm450_vm0, %v1990_v24  ;;  %v1989_v32 = vadd.f32 -1.0, %v1716_v31 }
 0x54e   : > { %v2270_v33 = vpop.f32.mrf.mxu1 }
 0x54f   : > { %1743 = vst.msk [vmem:[%s438_s13 + $0x10] sm:$0xff] %vm450_vm0, %v1989_v32  ;;  %v1992_v34 = vadd.f32 -1.0, %v2270_v33 }
 0x550   : > { %v1726_v35 = vpop.f32.mrf.mxu1 }
 0x551   : > { %1746 = vst.msk [vmem:[%s438_s13 + $0x28] sm:$0xff] %vm450_vm0, %v1992_v34  ;;  %v1991_v36 = vadd.f32 -1.0, %v1726_v35 }
 0x553   : > { %1745 = vst.msk [vmem:[%s438_s13 + $0x20] sm:$0xff] %vm450_vm0, %v1991_v36 }
 0x554   : > { %2600 = shalt.err (!%p2597_p4)
}
 0x555   : > { %s2601_s3 = scalar_lea.hbm %s3060_s26, 768  ;;  %s2605_s20 = scalar_lea.hbm %s3113_s9, 1536 }
 0x556   : > { %p2602_p12 = scmp.ne.s32.totalorder %s3060_s26, %s2601_s3  ;;  %p2606_p5 = scmp.lt.s32.totalorder %s3060_s26, %s3113_s9 }
 0x557   : > { %p2607_p8 = scmp.lt.s32.totalorder %s2605_s20, %s2601_s3 }
 0x558   : > { %p2603_p6 = pnand %p2602_p12, %p3143_p0 }
 0x559   : > { %p2608_p10 = por %p2607_p8, %p2606_p5 }
 0x55a   : > { %p2604_p2 = pneg %p2603_p6 }
 0x55c   : > { %p2609_p11 = pnand %p2608_p10, %p2604_p2 }
 0x55e   : > { %2612 = shalt.err (!%p2609_p11)
}
 0x55f   : > { %s2675_s17 = smov 128   ;;  %s2676_s25 = smov 8  }
 0x560   : > { %2297 = dma.vmem_to_hbm [thread:$0]  (%p3143_p0), %s3053_s16, 768, %s3060_s26, %s1748_s15, %s2675_s17, %s2675_s17, %s2676_s25  }
 0x561 PF: > { %s1776_s18 = sand.u32 1, %s2651_s30   ;;  %p3144_p13 = scmp.ne.s32.totalorder %s3131_s21, 0 }
 0x562   : > { %p3145_p7 = scmp.ge.s32.totalorder %s2663_s12, 2  ;;  %s1777_s28 = scalar_lea.sflag [#allocation4], %s1776_s18 }
 0x564   : > { %p2320_p9 = pnand %p3145_p7, %p3144_p13 }
 0x566   : > { %p2321_p1 = pneg %p2320_p9 }
 0x568   : > { %2646 = dma.done.wait (%p2321_p1), %s1777_s28, 768  }
 0x569   : > { %2648 = vsyncadd (%p2321_p1), %s1777_s28, 4294966528  ;;  %p25_p3 = scmp.ge.s32.totalorder %s2838_s22, 4   ;;  %s3146_s30 = smov %s2655_s10 }
 0x56a   : > { %s3147_s10 = smov %s2659_s11  ;;  %s3148_s11 = smov %s2850_s23 }
 0x56b   : > { %s3149_s12 = smov %s2838_s22  ;;  %27 = sbr.rel (!%p25_p3) target bundleno = 12 (0xc), region = 124 }
 0x570   :  { %1782 = vsyncpa [#allocation3], 1 }
 0x571   :  { %1784 = vsyncpa [#allocation3 + $0x1], 1 }
 0x572   :  { %1785 = vsyncpa [#allocation6], 1 }
 0x573   :  { %1786 = vsyncpa [#allocation9], 1 }
 0x574   :  { %1787 = vsyncpa [#allocation12], 1 }
 0x575   :  { %1788 = vsyncpa [#allocation4], 1 }
 0x576   :  { %1790 = vsyncpa [#allocation4 + $0x1], 1 }

</bundles_post_ra>
